<compile_context>
chip_gen: v7x
topology: tpu7x:2x2x1
jax: 0.10.0
libtpu: 0.0.40
codegen_flags: <defaults>
</compile_context>

<pallas_src>
import functools

import jax
import jax.numpy as jnp
from jax.experimental import pallas as pl
from jax.experimental.pallas import tpu as pltpu


def _round_up(v, m):
    return ((v + m - 1) // m) * m


def _conv_block2d_kernel(x_ref, w1_ref, b1_ref, w2_ref, b2_ref, o_ref,
                         xs_ref, hs_ref, *, H, W, P, cin, cmid):
    """Fused conv3x3 -> LReLU(0.1) -> conv3x3 -> LReLU(0.1) for one batch item.

    x_ref:  (1, Cin, H*W)     f32   raw flattened NCHW input (no pre-padding)
    w1_ref: (Cmid, 9*Cin_p)   bf16  folded conv1 weights, col = (dy*3+dx)*Cin_p + ci
    b1_ref: (Cmid, 1)         f32
    w2_ref: (Cout, 9*Cmid_p)  bf16  folded conv2 weights
    b2_ref: (Cout, 1)         f32
    o_ref:  (1, Cout, H*W)    bf16  lane-dense output
    xs_ref: (Cin_p,  2P+H*W)  f32   scratch: zero halo + image at lane offset P
    hs_ref: (Cmid_p, 2P+H*W)  f32   scratch: zero halo + h     at lane offset P
    """
    HW = H * W
    f32 = jnp.float32

    # Validity masks for the horizontal taps (in-kernel, no mask operand):
    # a dx=0 tap is invalid at output column 0, a dx=2 tap at output column W-1.
    col = jax.lax.broadcasted_iota(jnp.int32, (1, HW), 1) % W
    not_left = col != 0
    not_right = col != (W - 1)

    def load_padded(src, s_ref, nch):
        # Zero halo (and zero-padded channel rows) + lane-aligned interior store.
        rows, total = s_ref.shape
        s_ref[:, :P] = jnp.zeros((rows, P), f32)
        s_ref[:, P + HW:] = jnp.zeros((rows, total - (P + HW)), f32)
        if rows > nch:
            s_ref[nch:, P:P + HW] = jnp.zeros((rows - nch, HW), f32)
        s_ref[:nch, P:P + HW] = src

    def conv3x3(s_ref, wf):
        # Fold the 9 taps into one K = 9*Cpad matmul: RHS rows [t*Cpad:(t+1)*Cpad]
        # are the tap-shifted (and boundary-masked) view for tap t = dy*3 + dx.
        parts = []
        for dy in range(3):
            for dx in range(3):
                off = P + (dy - 1) * W + (dx - 1)
                tap = s_ref[:, off:off + HW]
                if dx == 0:
                    tap = jnp.where(not_left, tap, 0.0)
                elif dx == 2:
                    tap = jnp.where(not_right, tap, 0.0)
                parts.append(tap)
        rhs = jnp.concatenate(parts, axis=0).astype(jnp.bfloat16)
        return jnp.dot(wf, rhs, preferred_element_type=f32)

    # ---- conv1 + bias + LeakyReLU(0.1) ----
    load_padded(x_ref[0], xs_ref, cin)
    a1 = conv3x3(xs_ref, w1_ref[...]) + b1_ref[...]
    h = jnp.maximum(a1, 0.1 * a1)                       # LeakyReLU(0.1)

    # ---- conv2 + bias + LeakyReLU(0.1) ----
    load_padded(h, hs_ref, cmid)
    a2 = conv3x3(hs_ref, w2_ref[...]) + b2_ref[...]
    out = jnp.maximum(a2, 0.1 * a2)                     # LeakyReLU(0.1)
    o_ref[0] = out.astype(o_ref.dtype)


def conv_block2d_forward(params, x):
    """NCHW forward of conv_block2d via one fused Pallas kernel (bf16 output)."""
    w1, b1, w2, b2 = params["w1"], params["b1"], params["w2"], params["b2"]
    N, Cin, H, W = x.shape
    Cmid = w1.shape[0]
    Cout = w2.shape[0]
    HW = H * W
    P = _round_up(W + 1, 128)          # lane-aligned halo width (>= W+1)
    Cin_p = _round_up(Cin, 8)          # pad channel groups to the f32 sublane tile
    Cmid_p = _round_up(Cmid, 8)

    def fold(w, cpad):
        co, ci = w.shape[0], w.shape[1]
        wt = jnp.transpose(w, (0, 2, 3, 1))                     # (co, ky, kx, ci)
        wt = jnp.pad(wt, ((0, 0), (0, 0), (0, 0), (0, cpad - ci)))
        return wt.reshape(co, 9 * cpad).astype(jnp.bfloat16)

    w1f = fold(w1, Cin_p)                                       # (Cmid, 9*Cin_p)
    w2f = fold(w2, Cmid_p)                                      # (Cout, 9*Cmid_p)
    b1c = b1.reshape(Cmid, 1).astype(jnp.float32)
    b2c = b2.reshape(Cout, 1).astype(jnp.float32)

    # Free, contiguous metadata reshape -- no pad / cast / copy pass over the input.
    xf = x.reshape(N, Cin, HW)

    kernel = functools.partial(_conv_block2d_kernel, H=H, W=W, P=P,
                               cin=Cin, cmid=Cmid)
    out = pl.pallas_call(
        kernel,
        out_shape=jax.ShapeDtypeStruct((N, Cout, HW), jnp.bfloat16),
        grid=(N,),
        in_specs=[
            pl.BlockSpec((1, Cin, HW), lambda n: (n, 0, 0)),
            pl.BlockSpec(w1f.shape, lambda n: (0, 0)),
            pl.BlockSpec((Cmid, 1), lambda n: (0, 0)),
            pl.BlockSpec(w2f.shape, lambda n: (0, 0)),
            pl.BlockSpec((Cout, 1), lambda n: (0, 0)),
        ],
        out_specs=pl.BlockSpec((1, Cout, HW), lambda n: (n, 0, 0)),
        scratch_shapes=[
            pltpu.VMEM((Cin_p, 2 * P + HW), jnp.float32),
            pltpu.VMEM((Cmid_p, 2 * P + HW), jnp.float32),
        ],
        compiler_params=pltpu.CompilerParams(
            dimension_semantics=("parallel",),
            vmem_limit_bytes=32 * 1024 * 1024),
    )(xf, w1f, b1c, w2f, b2c)

    # Metadata-only reshape of contiguous trailing dims (no HBM pass).
    return out.reshape(N, Cout, H, W)


def init_conv_block2d(key, in_nc, out_nc):
    k1, k2, k3, k4 = jax.random.split(key, 4)
    s1 = 1.0 / (in_nc * 9) ** 0.5
    s2 = 1.0 / (out_nc * 9) ** 0.5
    return {
        "w1": s1 * jax.random.normal(k1, (out_nc, in_nc, 3, 3), jnp.float32),
        "b1": s1 * jax.random.normal(k2, (out_nc,), jnp.float32),
        "w2": s2 * jax.random.normal(k3, (out_nc, out_nc, 3, 3), jnp.float32),
        "b2": s2 * jax.random.normal(k4, (out_nc,), jnp.float32),
    }


def _reference_forward(params, x):
    """Pure-JAX reference with the same bf16 operand/output quantization."""
    w1 = params["w1"].astype(jnp.bfloat16).astype(jnp.float32)
    w2 = params["w2"].astype(jnp.bfloat16).astype(jnp.float32)
    b1, b2 = params["b1"], params["b2"]
    xq = x.astype(jnp.bfloat16).astype(jnp.float32)
    dn = ("NCHW", "OIHW", "NCHW")
    h = jax.lax.conv_general_dilated(xq, w1, (1, 1), ((1, 1), (1, 1)),
                                     dimension_numbers=dn)
    h = h + b1.reshape(1, -1, 1, 1)
    h = jnp.where(h >= 0, h, 0.1 * h)
    h = h.astype(jnp.bfloat16).astype(jnp.float32)
    y = jax.lax.conv_general_dilated(h, w2, (1, 1), ((1, 1), (1, 1)),
                                     dimension_numbers=dn)
    y = y + b2.reshape(1, -1, 1, 1)
    y = jnp.where(y >= 0, y, 0.1 * y)
    return y.astype(jnp.bfloat16).astype(jnp.float32)


if __name__ == "__main__":
    IN_NC, OUT_NC = 4, 8
    N, H, W = 2, 16, 16

    key = jax.random.PRNGKey(0)
    k_params, k_x = jax.random.split(key)
    params = init_conv_block2d(k_params, IN_NC, OUT_NC)
    x = jax.random.normal(k_x, (N, IN_NC, H, W), jnp.float32)

    fwd = jax.jit(conv_block2d_forward)
    y = jax.block_until_ready(fwd(params, x))

    assert y.shape == (N, OUT_NC, H, W), y.shape
    assert y.dtype == jnp.bfloat16, y.dtype
    yf = y.astype(jnp.float32)
    assert bool(jnp.all(jnp.isfinite(yf)))

    ref = _reference_forward(params, x)
    err = float(jnp.max(jnp.abs(yf - ref)))
    # Both sides are bf16-quantized (operands, h, and output); the residual is
    # f32 accumulation-order noise plus at most ~1 bf16 ulp on boundary roundings.
    assert err < 5e-2, f"max abs error vs reference: {err}"
    print("KERNEL_OK")
</pallas_src>

<mosaic_0001>
module attributes {stable_mosaic.version = 11 : i64} {
  func.func @_conv_block2d_kernel(%arg0: i32, %arg1: memref<1x4x256xf32, #tpu.memory_space<vmem>>, %arg2: memref<8x72xbf16, #tpu.memory_space<vmem>>, %arg3: memref<8x1xf32, #tpu.memory_space<vmem>>, %arg4: memref<8x72xbf16, #tpu.memory_space<vmem>>, %arg5: memref<8x1xf32, #tpu.memory_space<vmem>>, %arg6: memref<1x8x256xbf16, #tpu.memory_space<vmem>>, %arg7: memref<8x512xf32, #tpu.memory_space<vmem>>, %arg8: memref<8x512xf32, #tpu.memory_space<vmem>>) attributes {dimension_semantics = [#tpu.dimension_semantics<parallel>], iteration_bounds = array<i64: 2>, scalar_prefetch = 0 : i64, scratch_operands = 2 : i64, tpu.core_type = #tpu.core_type<tc>, window_params = [{transform_indices = @transform_0, window_bounds = array<i64: 1, 4, 256>}, {pipeline_mode = #tpu.pipeline_mode<synchronous>, transform_indices = @transform_1, window_bounds = array<i64: 8, 72>}, {pipeline_mode = #tpu.pipeline_mode<synchronous>, transform_indices = @transform_2, window_bounds = array<i64: 8, 1>}, {pipeline_mode = #tpu.pipeline_mode<synchronous>, transform_indices = @transform_3, window_bounds = array<i64: 8, 72>}, {pipeline_mode = #tpu.pipeline_mode<synchronous>, transform_indices = @transform_4, window_bounds = array<i64: 8, 1>}, {transform_indices = @transform_5, window_bounds = array<i64: 1, 8, 256>}]} {
    %0 = tpu.iota {dimensions = array<i32: 1>} : vector<1x256xi32>
    %c16_i32 = arith.constant 16 : i32
    %c0_i32 = arith.constant 0 : i32
    %1 = arith.cmpi eq, %c16_i32, %c0_i32 : i32
    %c1_i32 = arith.constant 1 : i32
    %2 = arith.select %1, %c1_i32, %c16_i32 : i32
    %3 = vector.broadcast %2 : i32 to vector<1x256xi32>
    %4 = arith.remsi %0, %3 : vector<1x256xi32>
    %c0_i32_0 = arith.constant 0 : i32
    %5 = vector.broadcast %c0_i32_0 : i32 to vector<1x256xi32>
    %6 = arith.cmpi ne, %4, %5 : vector<1x256xi32>
    %c0_i32_1 = arith.constant 0 : i32
    %7 = vector.broadcast %c0_i32_1 : i32 to vector<1x256xi32>
    %8 = arith.cmpi slt, %4, %7 : vector<1x256xi32>
    %c0_i32_2 = arith.constant 0 : i32
    %9 = arith.cmpi slt, %2, %c0_i32_2 : i32
    %10 = vector.broadcast %9 : i1 to vector<1x256xi1>
    %11 = vector.broadcast %10 : vector<1x256xi1> to vector<1x256xi1>
    %12 = arith.xori %8, %11 : vector<1x256xi1>
    %13 = arith.andi %12, %6 : vector<1x256xi1>
    %14 = vector.broadcast %2 : i32 to vector<1x256xi32>
    %15 = arith.addi %4, %14 : vector<1x256xi32>
    %16 = arith.select %13, %15, %4 : vector<1x256xi1>, vector<1x256xi32>
    %c0_i32_3 = arith.constant 0 : i32
    %17 = vector.broadcast %c0_i32_3 : i32 to vector<1x256xi32>
    %18 = arith.cmpi ne, %16, %17 : vector<1x256xi32>
    %c15_i32 = arith.constant 15 : i32
    %19 = vector.broadcast %c15_i32 : i32 to vector<1x256xi32>
    %20 = arith.cmpi ne, %16, %19 : vector<1x256xi32>
    %c0 = arith.constant 0 : index
    %c0_4 = arith.constant 0 : index
    %c0_5 = arith.constant 0 : index
    %21 = vector.load %arg1[%c0, %c0_4, %c0_5] : memref<1x4x256xf32, #tpu.memory_space<vmem>>, vector<1x4x256xf32>
    %22 = vector.shape_cast %21 : vector<1x4x256xf32> to vector<4x256xf32>
    %cst = arith.constant 0.000000e+00 : f32
    %23 = vector.broadcast %cst : f32 to vector<8x128xf32>
    %c0_6 = arith.constant 0 : index
    %c0_7 = arith.constant 0 : index
    %24 = vector.load %arg7[%c0_6, %c0_7] : memref<8x512xf32, #tpu.memory_space<vmem>>, vector<8x128xf32>
    tpu.vector_store %arg7[%c0_6, %c0_7], %23 {strides = array<i32>} : memref<8x512xf32, #tpu.memory_space<vmem>>, vector<8x128xf32>,
    %cst_8 = arith.constant 0.000000e+00 : f32
    %25 = vector.broadcast %cst_8 : f32 to vector<8x128xf32>
    %c0_9 = arith.constant 0 : index
    %c384 = arith.constant 384 : index
    %26 = vector.load %arg7[%c0_9, %c384] : memref<8x512xf32, #tpu.memory_space<vmem>>, vector<8x128xf32>
    tpu.vector_store %arg7[%c0_9, %c384], %25 {strides = array<i32>} : memref<8x512xf32, #tpu.memory_space<vmem>>, vector<8x128xf32>,
    %cst_10 = arith.constant 0.000000e+00 : f32
    %27 = vector.broadcast %cst_10 : f32 to vector<4x256xf32>
    %c4 = arith.constant 4 : index
    %c128 = arith.constant 128 : index
    %28 = vector.load %arg7[%c4, %c128] : memref<8x512xf32, #tpu.memory_space<vmem>>, vector<4x256xf32>
    tpu.vector_store %arg7[%c4, %c128], %27 {strides = array<i32>} : memref<8x512xf32, #tpu.memory_space<vmem>>, vector<4x256xf32>,
    %c0_11 = arith.constant 0 : index
    %c128_12 = arith.constant 128 : index
    %29 = vector.load %arg7[%c0_11, %c128_12] : memref<8x512xf32, #tpu.memory_space<vmem>>, vector<4x256xf32>
    tpu.vector_store %arg7[%c0_11, %c128_12], %22 {strides = array<i32>} : memref<8x512xf32, #tpu.memory_space<vmem>>, vector<4x256xf32>,
    %c0_13 = arith.constant 0 : index
    %c0_14 = arith.constant 0 : index
    %30 = vector.load %arg2[%c0_13, %c0_14] : memref<8x72xbf16, #tpu.memory_space<vmem>>, vector<8x72xbf16>
    %c0_15 = arith.constant 0 : index
    %c111 = arith.constant 111 : index
    %31 = vector.load %arg7[%c0_15, %c111] : memref<8x512xf32, #tpu.memory_space<vmem>>, vector<8x256xf32>
    %cst_16 = arith.constant 0.000000e+00 : f32
    %32 = vector.shape_cast %18 : vector<1x256xi1> to vector<1x256xi1>
    %33 = vector.broadcast %32 : vector<1x256xi1> to vector<8x256xi1>
    %34 = vector.broadcast %cst_16 : f32 to vector<8x256xf32>
    %35 = arith.select %33, %31, %34 : vector<8x256xi1>, vector<8x256xf32>
    %c0_17 = arith.constant 0 : index
    %c112 = arith.constant 112 : index
    %36 = vector.load %arg7[%c0_17, %c112] : memref<8x512xf32, #tpu.memory_space<vmem>>, vector<8x256xf32>
    %c0_18 = arith.constant 0 : index
    %c113 = arith.constant 113 : index
    %37 = vector.load %arg7[%c0_18, %c113] : memref<8x512xf32, #tpu.memory_space<vmem>>, vector<8x256xf32>
    %cst_19 = arith.constant 0.000000e+00 : f32
    %38 = vector.shape_cast %20 : vector<1x256xi1> to vector<1x256xi1>
    %39 = vector.broadcast %38 : vector<1x256xi1> to vector<8x256xi1>
    %40 = vector.broadcast %cst_19 : f32 to vector<8x256xf32>
    %41 = arith.select %39, %37, %40 : vector<8x256xi1>, vector<8x256xf32>
    %c0_20 = arith.constant 0 : index
    %c127 = arith.constant 127 : index
    %42 = vector.load %arg7[%c0_20, %c127] : memref<8x512xf32, #tpu.memory_space<vmem>>, vector<8x256xf32>
    %cst_21 = arith.constant 0.000000e+00 : f32
    %43 = vector.shape_cast %18 : vector<1x256xi1> to vector<1x256xi1>
    %44 = vector.broadcast %43 : vector<1x256xi1> to vector<8x256xi1>
    %45 = vector.broadcast %cst_21 : f32 to vector<8x256xf32>
    %46 = arith.select %44, %42, %45 : vector<8x256xi1>, vector<8x256xf32>
    %c0_22 = arith.constant 0 : index
    %c128_23 = arith.constant 128 : index
    %47 = vector.load %arg7[%c0_22, %c128_23] : memref<8x512xf32, #tpu.memory_space<vmem>>, vector<8x256xf32>
    %c0_24 = arith.constant 0 : index
    %c129 = arith.constant 129 : index
    %48 = vector.load %arg7[%c0_24, %c129] : memref<8x512xf32, #tpu.memory_space<vmem>>, vector<8x256xf32>
    %cst_25 = arith.constant 0.000000e+00 : f32
    %49 = vector.shape_cast %20 : vector<1x256xi1> to vector<1x256xi1>
    %50 = vector.broadcast %49 : vector<1x256xi1> to vector<8x256xi1>
    %51 = vector.broadcast %cst_25 : f32 to vector<8x256xf32>
    %52 = arith.select %50, %48, %51 : vector<8x256xi1>, vector<8x256xf32>
    %c0_26 = arith.constant 0 : index
    %c143 = arith.constant 143 : index
    %53 = vector.load %arg7[%c0_26, %c143] : memref<8x512xf32, #tpu.memory_space<vmem>>, vector<8x256xf32>
    %cst_27 = arith.constant 0.000000e+00 : f32
    %54 = vector.shape_cast %18 : vector<1x256xi1> to vector<1x256xi1>
    %55 = vector.broadcast %54 : vector<1x256xi1> to vector<8x256xi1>
    %56 = vector.broadcast %cst_27 : f32 to vector<8x256xf32>
    %57 = arith.select %55, %53, %56 : vector<8x256xi1>, vector<8x256xf32>
    %c0_28 = arith.constant 0 : index
    %c144 = arith.constant 144 : index
    %58 = vector.load %arg7[%c0_28, %c144] : memref<8x512xf32, #tpu.memory_space<vmem>>, vector<8x256xf32>
    %c0_29 = arith.constant 0 : index
    %c145 = arith.constant 145 : index
    %59 = vector.load %arg7[%c0_29, %c145] : memref<8x512xf32, #tpu.memory_space<vmem>>, vector<8x256xf32>
    %cst_30 = arith.constant 0.000000e+00 : f32
    %60 = vector.shape_cast %20 : vector<1x256xi1> to vector<1x256xi1>
    %61 = vector.broadcast %60 : vector<1x256xi1> to vector<8x256xi1>
    %62 = vector.broadcast %cst_30 : f32 to vector<8x256xf32>
    %63 = arith.select %61, %59, %62 : vector<8x256xi1>, vector<8x256xf32>
    %64 = tpu.concatenate %35, %36, %41, %46, %47, %52, %57, %58, %63 in 0 : vector<8x256xf32>, vector<8x256xf32>, vector<8x256xf32>, vector<8x256xf32>, vector<8x256xf32>, vector<8x256xf32>, vector<8x256xf32>, vector<8x256xf32>, vector<8x256xf32> -> vector<72x256xf32>
    %65 = arith.truncf %64 : vector<72x256xf32> to vector<72x256xbf16>
    %cst_31 = arith.constant dense<0.000000e+00> : vector<8x256xf32>
    %66 = tpu.matmul %30, %65, %cst_31 {dimension_numbers = #tpu.dot_dimension_numbers<[1], [0], [0], [1], [0, 0, 1, 1], [], []>} : vector<8x72xbf16>, vector<72x256xbf16>, vector<8x256xf32> -> vector<8x256xf32>
    %c0_32 = arith.constant 0 : index
    %c0_33 = arith.constant 0 : index
    %67 = vector.load %arg3[%c0_32, %c0_33] : memref<8x1xf32, #tpu.memory_space<vmem>>, vector<8x1xf32>
    %68 = vector.broadcast %67 : vector<8x1xf32> to vector<8x256xf32>
    %69 = arith.addf %66, %68 : vector<8x256xf32>
    %cst_34 = arith.constant 1.000000e-01 : f32
    %70 = vector.broadcast %cst_34 : f32 to vector<8x256xf32>
    %71 = arith.mulf %70, %69 : vector<8x256xf32>
    %72 = arith.maximumf %69, %71 : vector<8x256xf32>
    %cst_35 = arith.constant 0.000000e+00 : f32
    %73 = vector.broadcast %cst_35 : f32 to vector<8x128xf32>
    %c0_36 = arith.constant 0 : index
    %c0_37 = arith.constant 0 : index
    %74 = vector.load %arg8[%c0_36, %c0_37] : memref<8x512xf32, #tpu.memory_space<vmem>>, vector<8x128xf32>
    tpu.vector_store %arg8[%c0_36, %c0_37], %73 {strides = array<i32>} : memref<8x512xf32, #tpu.memory_space<vmem>>, vector<8x128xf32>,
    %cst_38 = arith.constant 0.000000e+00 : f32
    %75 = vector.broadcast %cst_38 : f32 to vector<8x128xf32>
    %c0_39 = arith.constant 0 : index
    %c384_40 = arith.constant 384 : index
    %76 = vector.load %arg8[%c0_39, %c384_40] : memref<8x512xf32, #tpu.memory_space<vmem>>, vector<8x128xf32>
    tpu.vector_store %arg8[%c0_39, %c384_40], %75 {strides = array<i32>} : memref<8x512xf32, #tpu.memory_space<vmem>>, vector<8x128xf32>,
    %c0_41 = arith.constant 0 : index
    %c128_42 = arith.constant 128 : index
    %77 = vector.load %arg8[%c0_41, %c128_42] : memref<8x512xf32, #tpu.memory_space<vmem>>, vector<8x256xf32>
    tpu.vector_store %arg8[%c0_41, %c128_42], %72 {strides = array<i32>} : memref<8x512xf32, #tpu.memory_space<vmem>>, vector<8x256xf32>,
    %c0_43 = arith.constant 0 : index
    %c0_44 = arith.constant 0 : index
    %78 = vector.load %arg4[%c0_43, %c0_44] : memref<8x72xbf16, #tpu.memory_space<vmem>>, vector<8x72xbf16>
    %c0_45 = arith.constant 0 : index
    %c111_46 = arith.constant 111 : index
    %79 = vector.load %arg8[%c0_45, %c111_46] : memref<8x512xf32, #tpu.memory_space<vmem>>, vector<8x256xf32>
    %cst_47 = arith.constant 0.000000e+00 : f32
    %80 = vector.shape_cast %18 : vector<1x256xi1> to vector<1x256xi1>
    %81 = vector.broadcast %80 : vector<1x256xi1> to vector<8x256xi1>
    %82 = vector.broadcast %cst_47 : f32 to vector<8x256xf32>
    %83 = arith.select %81, %79, %82 : vector<8x256xi1>, vector<8x256xf32>
    %c0_48 = arith.constant 0 : index
    %c112_49 = arith.constant 112 : index
    %84 = vector.load %arg8[%c0_48, %c112_49] : memref<8x512xf32, #tpu.memory_space<vmem>>, vector<8x256xf32>
    %c0_50 = arith.constant 0 : index
    %c113_51 = arith.constant 113 : index
    %85 = vector.load %arg8[%c0_50, %c113_51] : memref<8x512xf32, #tpu.memory_space<vmem>>, vector<8x256xf32>
    %cst_52 = arith.constant 0.000000e+00 : f32
    %86 = vector.shape_cast %20 : vector<1x256xi1> to vector<1x256xi1>
    %87 = vector.broadcast %86 : vector<1x256xi1> to vector<8x256xi1>
    %88 = vector.broadcast %cst_52 : f32 to vector<8x256xf32>
    %89 = arith.select %87, %85, %88 : vector<8x256xi1>, vector<8x256xf32>
    %c0_53 = arith.constant 0 : index
    %c127_54 = arith.constant 127 : index
    %90 = vector.load %arg8[%c0_53, %c127_54] : memref<8x512xf32, #tpu.memory_space<vmem>>, vector<8x256xf32>
    %cst_55 = arith.constant 0.000000e+00 : f32
    %91 = vector.shape_cast %18 : vector<1x256xi1> to vector<1x256xi1>
    %92 = vector.broadcast %91 : vector<1x256xi1> to vector<8x256xi1>
    %93 = vector.broadcast %cst_55 : f32 to vector<8x256xf32>
    %94 = arith.select %92, %90, %93 : vector<8x256xi1>, vector<8x256xf32>
    %c0_56 = arith.constant 0 : index
    %c128_57 = arith.constant 128 : index
    %95 = vector.load %arg8[%c0_56, %c128_57] : memref<8x512xf32, #tpu.memory_space<vmem>>, vector<8x256xf32>
    %c0_58 = arith.constant 0 : index
    %c129_59 = arith.constant 129 : index
    %96 = vector.load %arg8[%c0_58, %c129_59] : memref<8x512xf32, #tpu.memory_space<vmem>>, vector<8x256xf32>
    %cst_60 = arith.constant 0.000000e+00 : f32
    %97 = vector.shape_cast %20 : vector<1x256xi1> to vector<1x256xi1>
    %98 = vector.broadcast %97 : vector<1x256xi1> to vector<8x256xi1>
    %99 = vector.broadcast %cst_60 : f32 to vector<8x256xf32>
    %100 = arith.select %98, %96, %99 : vector<8x256xi1>, vector<8x256xf32>
    %c0_61 = arith.constant 0 : index
    %c143_62 = arith.constant 143 : index
    %101 = vector.load %arg8[%c0_61, %c143_62] : memref<8x512xf32, #tpu.memory_space<vmem>>, vector<8x256xf32>
    %cst_63 = arith.constant 0.000000e+00 : f32
    %102 = vector.shape_cast %18 : vector<1x256xi1> to vector<1x256xi1>
    %103 = vector.broadcast %102 : vector<1x256xi1> to vector<8x256xi1>
    %104 = vector.broadcast %cst_63 : f32 to vector<8x256xf32>
    %105 = arith.select %103, %101, %104 : vector<8x256xi1>, vector<8x256xf32>
    %c0_64 = arith.constant 0 : index
    %c144_65 = arith.constant 144 : index
    %106 = vector.load %arg8[%c0_64, %c144_65] : memref<8x512xf32, #tpu.memory_space<vmem>>, vector<8x256xf32>
    %c0_66 = arith.constant 0 : index
    %c145_67 = arith.constant 145 : index
    %107 = vector.load %arg8[%c0_66, %c145_67] : memref<8x512xf32, #tpu.memory_space<vmem>>, vector<8x256xf32>
    %cst_68 = arith.constant 0.000000e+00 : f32
    %108 = vector.shape_cast %20 : vector<1x256xi1> to vector<1x256xi1>
    %109 = vector.broadcast %108 : vector<1x256xi1> to vector<8x256xi1>
    %110 = vector.broadcast %cst_68 : f32 to vector<8x256xf32>
    %111 = arith.select %109, %107, %110 : vector<8x256xi1>, vector<8x256xf32>
    %112 = tpu.concatenate %83, %84, %89, %94, %95, %100, %105, %106, %111 in 0 : vector<8x256xf32>, vector<8x256xf32>, vector<8x256xf32>, vector<8x256xf32>, vector<8x256xf32>, vector<8x256xf32>, vector<8x256xf32>, vector<8x256xf32>, vector<8x256xf32> -> vector<72x256xf32>
    %113 = arith.truncf %112 : vector<72x256xf32> to vector<72x256xbf16>
    %cst_69 = arith.constant dense<0.000000e+00> : vector<8x256xf32>
    %114 = tpu.matmul %78, %113, %cst_69 {dimension_numbers = #tpu.dot_dimension_numbers<[1], [0], [0], [1], [0, 0, 1, 1], [], []>} : vector<8x72xbf16>, vector<72x256xbf16>, vector<8x256xf32> -> vector<8x256xf32>
    %c0_70 = arith.constant 0 : index
    %c0_71 = arith.constant 0 : index
    %115 = vector.load %arg5[%c0_70, %c0_71] : memref<8x1xf32, #tpu.memory_space<vmem>>, vector<8x1xf32>
    %116 = vector.broadcast %115 : vector<8x1xf32> to vector<8x256xf32>
    %117 = arith.addf %114, %116 : vector<8x256xf32>
    %cst_72 = arith.constant 1.000000e-01 : f32
    %118 = vector.broadcast %cst_72 : f32 to vector<8x256xf32>
    %119 = arith.mulf %118, %117 : vector<8x256xf32>
    %120 = arith.maximumf %117, %119 : vector<8x256xf32>
    %121 = arith.truncf %120 : vector<8x256xf32> to vector<8x256xbf16>
    %c0_73 = arith.constant 0 : index
    %c0_74 = arith.constant 0 : index
    %c0_75 = arith.constant 0 : index
    %122 = vector.load %arg6[%c0_73, %c0_74, %c0_75] : memref<1x8x256xbf16, #tpu.memory_space<vmem>>, vector<1x8x256xbf16>
    %123 = vector.shape_cast %122 : vector<1x8x256xbf16> to vector<8x256xbf16>
    %124 = vector.shape_cast %121 : vector<8x256xbf16> to vector<1x8x256xbf16>
    tpu.vector_store %arg6[%c0_73, %c0_74, %c0_75], %124 {strides = array<i32>} : memref<1x8x256xbf16, #tpu.memory_space<vmem>>, vector<1x8x256xbf16>,
    return
  }
  func.func @transform_0(%arg0: i32) -> (i32, i32, i32) {
    %c0_i32 = arith.constant 0 : i32
    %c0_i32_0 = arith.constant 0 : i32
    %c0_i32_1 = arith.constant 0 : i32
    return %arg0, %c0_i32, %c0_i32_0 : i32, i32, i32
  }
  func.func @transform_1(%arg0: i32) -> (i32, i32) {
    %c0_i32 = arith.constant 0 : i32
    %c0_i32_0 = arith.constant 0 : i32
    %c0_i32_1 = arith.constant 0 : i32
    return %c0_i32, %c0_i32_0 : i32, i32
  }
  func.func @transform_2(%arg0: i32) -> (i32, i32) {
    %c0_i32 = arith.constant 0 : i32
    %c0_i32_0 = arith.constant 0 : i32
    %c0_i32_1 = arith.constant 0 : i32
    return %c0_i32, %c0_i32_0 : i32, i32
  }
  func.func @transform_3(%arg0: i32) -> (i32, i32) {
    %c0_i32 = arith.constant 0 : i32
    %c0_i32_0 = arith.constant 0 : i32
    %c0_i32_1 = arith.constant 0 : i32
    return %c0_i32, %c0_i32_0 : i32, i32
  }
  func.func @transform_4(%arg0: i32) -> (i32, i32) {
    %c0_i32 = arith.constant 0 : i32
    %c0_i32_0 = arith.constant 0 : i32
    %c0_i32_1 = arith.constant 0 : i32
    return %c0_i32, %c0_i32_0 : i32, i32
  }
  func.func @transform_5(%arg0: i32) -> (i32, i32, i32) {
    %c0_i32 = arith.constant 0 : i32
    %c0_i32_0 = arith.constant 0 : i32
    %c0_i32_1 = arith.constant 0 : i32
    return %arg0, %c0_i32, %c0_i32_0 : i32, i32, i32
  }
}

</mosaic_0001>

<bundles_post_ra>
// kernel: conv_block2d_forward.1
= control target key start
LH: loop header
LB: loop body
LE: loop exit
PB: predicated region body
PF: predicated region fallthrough
CT: control target
= control target key end

     0   :  { %s920_s18 = smov 0   ;;  %s1168_s0 = inlined_call_operand.vmem [shape: f32[2,4,256], index: 0, kind: input, shape index: {}]   ;;  %s1169_s1 = inlined_call_operand.vmem [shape: bf16[8,72], index: 1, kind: input, shape index: {}]   ;;  %s1170_s2 = inlined_call_operand.vmem [shape: f32[8,1], index: 2, kind: input, shape index: {}]   ;;  %s1171_s3 = inlined_call_operand.vmem [shape: bf16[8,72], index: 3, kind: input, shape index: {}]   ;;  %s1172_s4 = inlined_call_operand.vmem [shape: f32[8,1], index: 4, kind: input, shape index: {}]   ;;  %s1173_s5 = inlined_call_operand.vmem [shape: bf16[2,8,256], index: 5, kind: output, shape index: {}]  }
   0x1 LB: > { %s703_s19 = sadd.s32 4294967295, %s877_s18   ;;  %p707_p0 = scmp.ge.s32.totalorder %s877_s18, 1  ;;  %s877_s18 = sphi %s920_s18, %s15_s18  }
   0x2   : > { %p187_p1 = scmp.lt.s32.totalorder %s877_s18, 3 }
   0x4   : > { %p188_p2 = pnand %p707_p0, %p187_p1 }
   0x5   : > { %v879_v0 = vmov (!%p188_p2), 0.0   ;;  %s880_s20 = smov (!%p188_p2), 17   ;;  %s881_s21 = smov (!%p188_p2), 15   ;;  %v888_v7 = vmov (!%p188_p2), 0   ;;  %v398_v8 = vld [vmem:[%s1170_s2] sm:$0xff] (!%p188_p2)  ;;  %v226_v11 = vlaneseq (!%p188_p2)  ;;  %vm284_vm1 = vcmask (!%p188_p2), 138240  }
   0x6   : > { %191 = sbr.rel (%p188_p2) target bundleno = 766 (0x2fe), region = 40  ;;  %278 = vrot.lane.b32.xlu1 (!%p188_p2), %v879_v0, %s880_s20  ;;  %260 = vst [vmem:[#allocation2 + $0x8] sm:$0xf0] (!%p188_p2), %v879_v0  ;;  %261 = vst [vmem:[#allocation2 + $0x10] sm:$0xf0] (!%p188_p2), %v879_v0  ;;  %295 = vrot.lane.b32.xlu0 (!%p188_p2), %v879_v0, %s881_s21  ;;  %p215_p3 = scmp.lt.s32.totalorder (!%p188_p2), %s703_s19, 1 }
   0x7   : > { %s882_s22 = smov (!%p188_p2), 16   ;;  %s883_s27 = smov (!%p188_p2), 1   ;;  %447 = vmatprep.mubr.bf16.mxu0 (!%p188_p2), %v888_v7  ;;  %829 = vset.pattern.permute.xlu0 (!%p188_p2), %v888_v7  ;;  %v227_v13 = vand.u32 (!%p188_p2), 127, %v226_v11  ;;  %vm372_vm2 = vcmask (!%p188_p2), 130048   ;;  %vm314_vm4 = vcmask (!%p188_p2), 7168   ;;  %vm889_vm5 = vmmov (!%p188_p2), 1  }
   0x8   : > { %s884_s28 = smov (!%p188_p2), 127   ;;  %s885_s29 = smov (!%p188_p2), 112   ;;  %626 = vmatprep.mubr.bf16.mxu1 (!%p188_p2), %v888_v7  ;;  %vm301_vm7 = vcmask (!%p188_p2), 121856   ;;  %vm333_vm12 = vcmask (!%p188_p2), 1039360   ;;  %vm1176_vm14 = vcmask (!%p188_p2), 916480  }
   0x9   : > { %s886_s30 = smov (!%p188_p2), 111   ;;  %s887_s6 = smov (!%p188_p2), 113   ;;  %v228_v15 = vadd.s32 (!%p188_p2), 128, %v227_v13  ;;  %v233_v19 = vand.u32 (!%p188_p2), 15, %v227_v13  ;;  %v464_v61 = vld [vmem:[%s1171_s3] sm:$0xf] (!%p188_p2) }
   0xa   : > { %366 = vrot.lane.b32.xlu1 (!%p188_p2), %v879_v0, %s882_s22 }
   0xb   : > { %v240_v18 = vand.u32 (!%p188_p2), 15, %v228_v15  ;;  %vm985_vm3 = vcmp.ne.s32.totalorder (!%p188_p2), %v233_v19, 0  ;;  %vm1012_vm10 = vcmp.ne.s32.totalorder (!%p188_p2), %v233_v19, 15 }
   0xc   : > { %vm1003_vm8 = vmpackc.low (!%p188_p2), %vm889_vm5, %vm985_vm3 }
   0xd   : > { %s1201_s19 = smov (!%p215_p3, %s703_s19), 1  ;;  %vm981_vm0 = vcmp.ne.s32.totalorder %v240_v18, 0  ;;  %vm1007_vm9 = vcmp.ne.s32.totalorder %v240_v18, 15  ;;  %vm1175_vm13 = vmpackc.low %vm985_vm3, %vm1012_vm10 }
   0xe   : > { %s767_s23 = sshll.u32 %s1201_s19, 3  ;;  %308 = vrot.lane.b32.xlu1 %v879_v0, %s883_s27  ;;  %vm994_vm6 = vmpackc.low %vm889_vm5, %vm981_vm0 }
   0xf   : > { %s219_s26 = scalar_lea.vmem %s1168_s0, %s767_s23  ;;  %vm1174_vm11 = vmpackc.low %vm981_vm0, %vm1007_vm9  ;;  %s224_s17 = scalar_lea.vmem %s1173_s5, %s767_s23 }
  0x10   : > { %v257_v1 = vld [vmem:[%s219_s26] sm:$0xff]  ;;  %vm1046_vm15 = vmpackc.low %vm1007_vm9, %vm889_vm5 }
  0x11   : > { %v263_v2 = vcombine.high %v257_v1, %v257_v1  ;;  %265 = vst [vmem:[#allocation2 + $0x8] sm:$0xf] %v257_v1 }
  0x13   : > { %266 = vst [vmem:[#allocation2 + $0x10] sm:$0xf] %v263_v2 }
  0x18   : > { %v946_v3 = vld [vmem:[#allocation2 + $0x8] sm:$0xff] }
  0x19   : > { %327 = vrot.lane.b32.xlu1 %v946_v3, %s884_s28 }
  0x1a   : > { %v950_v4 = vld [vmem:[#allocation2 + $0x10] sm:$0xff] }
  0x1b   : > { %v789_v5 = vpack.i.bf16 %v950_v4, %v946_v3  ;;  %v809_v6 = vpack.i.bf16 %v879_v0, %v950_v4 }
  0x1d   : > { %790 = vrot.lane.b32.xlu0 %v789_v5, %s880_s20  ;;  %805 = vrot.lane.b32.xlu1 %v789_v5, %s883_s27 }
  0x21   : > { %795 = vrot.lane.b32.xlu0 %v789_v5, %s882_s22  ;;  %820 = vrot.lane.b32.xlu1 %v809_v6, %s885_s29 }
  0x25   : > { %800 = vrot.lane.b32.xlu0 %v789_v5, %s881_s21  ;;  %377 = vrot.lane.b32.xlu1 %v946_v3, %s885_s29 }
  0x29   : > { %810 = vrot.lane.b32.xlu0 %v809_v6, %s884_s28  ;;  %357 = vrot.lane.b32.xlu1 %v879_v0, %s886_s30 }
  0x2d   : > { %815 = vrot.lane.b32.xlu0 %v809_v6, %s887_s6  ;;  %549 = vrot.lane.b32.xlu1 %v879_v0, %s882_s22 }
  0x31   : > { %340 = vrot.lane.b32.xlu0 %v946_v3, %s887_s6  ;;  %495 = vrot.lane.b32.xlu1 %v879_v0, %s883_s27 }
  0x35   : > { %825 = vrot.lane.b32.xlu0 %v789_v5, %s886_s30 }
  0x39   : > { %401 = vperm.xlu0 %829, %v398_v8  }
  0x3d   : > { %471 = vrot.lane.b32.xlu0 %v879_v0, %s880_s20 }
  0x41   : > { %483 = vrot.lane.b32.xlu0 %v879_v0, %s881_s21 }
  0x78   : > { %v279_v9 = vpop.permute.xlu1 %278  ;;  %v296_v14 = vpop.permute.xlu0 %295 }
  0x7c   : > { %v367_v10 = vpop.permute.xlu1 %366 }
  0x80   : > { %v309_v12 = vpop.permute.xlu1 %308 }
  0x8b   : > { %v328_v16 = vpop.permute.xlu1 %327 }
  0x8f   : > { %v791_v17 = vpop.permute.xlu0 %790  ;;  %v806_v22 = vpop.permute.xlu1 %805 }
  0x90   : > { %v793_v20 = vunpack.i.h.bf16 %v791_v17  ;;  %v792_v21 = vunpack.i.l.bf16 %v791_v17  ;;  %v808_v27 = vunpack.i.h.bf16 %v806_v22  ;;  %v807_v29 = vunpack.i.l.bf16 %v806_v22 }
  0x92   : > { %v286_v30 = vsel %vm284_vm1, %v792_v21, %v793_v20  ;;  %v285_v33 = vsel %vm284_vm1, %v279_v9, %v792_v21  ;;  %v316_v40 = vsel %vm314_vm4, %v807_v29, %v808_v27  ;;  %v315_v45 = vsel %vm314_vm4, %v309_v12, %v807_v29  ;;  %v267_v20 = vld [vmem:[%s1169_s1] sm:$0xf] }
  0x93   : > { %v796_v23 = vpop.permute.xlu0 %795  ;;  %v821_v44 = vpop.permute.xlu1 %820 }
  0x94   : > { %v798_v25 = vunpack.i.h.bf16 %v796_v23  ;;  %v797_v26 = vunpack.i.l.bf16 %v796_v23  ;;  %v823_v53 = vunpack.i.h.bf16 %v821_v44  ;;  %v822_v54 = vunpack.i.l.bf16 %v821_v44 }
  0x96   : > { %v374_v31 = vsel %vm372_vm2, %v797_v26, %v798_v25  ;;  %v373_v34 = vsel %vm372_vm2, %v367_v10, %v797_v26  ;;  %v385_v2 = vsel %vm1176_vm14, %v822_v54, %v823_v53 }
  0x97   : > { %v801_v35 = vpop.permute.xlu0 %800  ;;  %v713_v36 = vpack.c.bf16 %v374_v31, %v286_v30  ;;  %v716_v38 = vpack.c.bf16 %v373_v34, %v285_v33  ;;  %v378_v62 = vpop.permute.xlu1 %377 }
  0x98   : > { %v803_v41 = vunpack.i.h.bf16 %v801_v35  ;;  %v802_v42 = vunpack.i.l.bf16 %v801_v35 }
  0x99   : > { %714 = vmatprep.subr.msk.bf16.mxu0 %vm994_vm6, %v713_v36 }
  0x9a   : > { %v302_v46 = vsel %vm301_vm7, %v296_v14, %v802_v42  ;;  %v303_v47 = vsel %vm301_vm7, %v802_v42, %v803_v41  ;;  %717 = vmatpush1.bf16.msk.msra.mxu0 %vm1003_vm8, %v716_v38  ;;  %v579_v38 = vld [vmem:[%s1172_s4] sm:$0xff] }
  0x9b   : > { %v719_v48 = vpack.c.bf16 %v316_v40, %v303_v47  ;;  %v722_v49 = vpack.c.bf16 %v315_v45, %v302_v46  ;;  %v811_v50 = vpop.permute.xlu0 %810  ;;  %v358_v10 = vpop.permute.xlu1 %357 }
  0x9c   : > { %v813_v51 = vunpack.i.h.bf16 %v811_v50  ;;  %v812_v52 = vunpack.i.l.bf16 %v811_v50 }
  0x9d   : > { %720 = vmatprep.subr.msk.bf16.mxu0 %vm1174_vm11, %v719_v48  ;;  %vm1055_vm11 = vmpackc.low %vm1012_vm10, %vm889_vm5  ;;  %vm359_vm5 = vcmask 908288  }
  0x9e   : > { %v334_v55 = vsel %vm333_vm12, %v328_v16, %v812_v52  ;;  %v335_v56 = vsel %vm333_vm12, %v812_v52, %v813_v51  ;;  %723 = vmatpush1.bf16.msk.msra.mxu0 %vm1175_vm13, %v722_v49  ;;  %vm1177_vm13 = vcmask 924672  }
  0x9f   : > { %v725_v58 = vpack.c.bf16 %v335_v56, %v950_v4  ;;  %v728_v59 = vpack.c.bf16 %v334_v55, %v946_v3  ;;  %v816_v60 = vpop.permute.xlu0 %815  ;;  %v384_v3 = vsel %vm1176_vm14, %v378_v62, %v822_v54  ;;  %vm408_vm14 = vcmask 1043456   ;;  %v550_v40 = vpop.permute.xlu1 %549 }
  0xa0   : > { %v818_v63 = vunpack.i.h.bf16 %v816_v60  ;;  %v817_v1 = vunpack.i.l.bf16 %v816_v60 }
  0xa1   : > { %726 = vmatprep.subr.msk.bf16.mxu0 %vm1046_vm15, %v725_v58 }
  0xa2   : > { %729 = vmatpush1.bf16.msk.msra.mxu0 %vm1055_vm11, %v728_v59  ;;  %v348_v4 = vsel %vm1177_vm13, %v817_v1, %v818_v63 }
  0xa3   : > { %v341_v5 = vpop.permute.xlu0 %340  ;;  %v731_v6 = vpack.c.bf16 %v385_v2, %v348_v4  ;;  %v496_v42 = vpop.permute.xlu1 %495 }
  0xa4   : > { %v347_v7 = vsel %vm1177_vm13, %v341_v5, %v817_v1  ;;  %vm404_vm13 = vcmask 588800  }
  0xa5   : > { %v734_v8 = vpack.c.bf16 %v384_v3, %v347_v7  ;;  %732 = vmatprep.subr.msk.bf16.mxu0 %vm994_vm6, %v731_v6 }
  0xa7   : > { %v826_v9 = vpop.permute.xlu0 %825  ;;  %735 = vmatpush1.bf16.msk.msra.mxu0 %vm1003_vm8, %v734_v8 }
  0xa8   : > { %v828_v11 = vunpack.i.h.bf16 %v826_v9  ;;  %v827_v12 = vunpack.i.l.bf16 %v826_v9 }
  0xaa   : > { %v361_v13 = vsel %vm359_vm5, %v828_v11, %v358_v10  ;;  %v360_v14 = vsel %vm359_vm5, %v827_v12, %v828_v11 }
  0xab   : > { %v365_v15 = vsel %vm1007_vm9, %v361_v13, 0.0  ;;  %v364_v16 = vsel %vm1012_vm10, %v360_v14, 0.0 }
  0xac   : > { %v397_v17 = vpack.c.bf16 %v365_v15, %v365_v15  ;;  %v396_v18 = vpack.c.bf16 %v364_v16, %v364_v16 }
  0xae   : > { %736 = vmatprep.subr.msk.bf16.mxu0 %vm408_vm14, %v397_v17  ;;  %v410_v19 = vsel %vm408_vm14, %v396_v18, 0 }
  0xaf   : > { %424 = vmatpush1.bf16.msra.mxu0 %v410_v19 }
  0xb2   : > { %737 = vmatmul.mubr.msk.bf16.vlgmr.msra.gmra.mrb[0].mxu0 %vm404_vm13, %v267_v20 }
  0xb8   : > { %v402_v21 = vpop.permute.xlu0 %401 }
  0xbc   : > { %v472_v41 = vpop.permute.xlu0 %471 }
  0xc0   : > { %v484_v44 = vpop.permute.xlu0 %483 }
 0x185   : > { %v449_v22 = vpop.f32.mrb[0].mxu0 }
 0x186   : > { %v450_v23 = vadd.f32 %v449_v22, %v402_v21  ;;  %v451_v25 = vpop.f32.mrb[1].mxu0 }
 0x187   : > { %v452_v26 = vadd.f32 %v451_v25, %v402_v21  ;;  %v453_v27 = vpop.f32.mrb[2].mxu0 }
 0x188   : > { %v456_v29 = vmul.f32 0.1, %v450_v23  ;;  %v454_v30 = vpop.f32.mrb[3].mxu0 }
 0x189   : > { %v457_v31 = vmul.f32 0.1, %v452_v26 }
 0x18a   : > { %v1083_v33 = vmax.f32 %v450_v23, %v456_v29 }
 0x18b   : > { %v1085_v34 = vmax.f32 %v452_v26, %v457_v31 }
 0x18c   : > { %525 = vrot.lane.b32.xlu0 %v1083_v33, %s887_s6  ;;  %513 = vrot.lane.b32.xlu1 %v1083_v33, %s884_s28 }
 0x18d   : > { %v840_v35 = vpack.i.bf16 %v1085_v34, %v1083_v33  ;;  %v850_v36 = vpack.i.bf16 %v879_v0, %v1085_v34 }
 0x190   : > { %841 = vrot.lane.b32.xlu0 %v840_v35, %s881_s21  ;;  %831 = vrot.lane.b32.xlu1 %v840_v35, %s880_s20 }
 0x194   : > { %851 = vrot.lane.b32.xlu0 %v850_v36, %s884_s28  ;;  %836 = vrot.lane.b32.xlu1 %v840_v35, %s882_s22 }
 0x198   : > { %856 = vrot.lane.b32.xlu0 %v850_v36, %s887_s6  ;;  %846 = vrot.lane.b32.xlu1 %v840_v35, %s883_s27 }
 0x19c   : > { %866 = vrot.lane.b32.xlu0 %v840_v35, %s886_s30  ;;  %559 = vrot.lane.b32.xlu1 %v1083_v33, %s885_s29 }
 0x1a0   : > { %582 = vperm.xlu0 %829, %v579_v38   ;;  %861 = vrot.lane.b32.xlu1 %v850_v36, %s885_s29 }
 0x1a4   : > { %541 = vrot.lane.b32.xlu1 %v879_v0, %s886_s30 }
 0x1fe   : > { %v526_v45 = vpop.permute.xlu0 %525  ;;  %v514_v46 = vpop.permute.xlu1 %513 }
 0x202   : > { %v842_v47 = vpop.permute.xlu0 %841  ;;  %v832_v48 = vpop.permute.xlu1 %831 }
 0x203   : > { %v834_v49 = vunpack.i.h.bf16 %v832_v48  ;;  %v833_v50 = vunpack.i.l.bf16 %v832_v48  ;;  %v844_v55 = vunpack.i.h.bf16 %v842_v47  ;;  %v843_v56 = vunpack.i.l.bf16 %v842_v47 }
 0x205   : > { %v478_v58 = vsel %vm284_vm1, %v833_v50, %v834_v49  ;;  %v477_v0 = vsel %vm284_vm1, %v472_v41, %v833_v50  ;;  %v489_v7 = vsel %vm301_vm7, %v484_v44, %v843_v56  ;;  %v490_v8 = vsel %vm301_vm7, %v843_v56, %v844_v55  ;;  %vm1194_vm1 = vmpackc.low %vm981_vm0, %vm1007_vm9 }
 0x206   : > { %v852_v51 = vpop.permute.xlu0 %851  ;;  %v837_v52 = vpop.permute.xlu1 %836  ;;  %vm1198_vm7 = vcmask 916480  }
 0x207   : > { %v839_v53 = vunpack.i.h.bf16 %v837_v52  ;;  %v838_v54 = vunpack.i.l.bf16 %v837_v52  ;;  %v854_v59 = vunpack.i.h.bf16 %v852_v51  ;;  %v853_v60 = vunpack.i.l.bf16 %v852_v51 }
 0x209   : > { %v556_v62 = vsel %vm372_vm2, %v838_v54, %v839_v53  ;;  %v555_v63 = vsel %vm372_vm2, %v550_v40, %v838_v54  ;;  %v520_v9 = vsel %vm333_vm12, %v853_v60, %v854_v59  ;;  %v519_v18 = vsel %vm333_vm12, %v514_v46, %v853_v60  ;;  %vm1195_vm2 = vmpackc.low %vm985_vm3, %vm1012_vm10 }
 0x20a   : > { %v857_v1 = vpop.permute.xlu0 %856  ;;  %v847_v2 = vpop.permute.xlu1 %846  ;;  %v739_v3 = vpack.c.bf16 %v556_v62, %v478_v58  ;;  %v742_v4 = vpack.c.bf16 %v555_v63, %v477_v0  ;;  %v751_v19 = vpack.c.bf16 %v520_v9, %v1085_v34  ;;  %v754_v25 = vpack.c.bf16 %v519_v18, %v1083_v33  ;;  %vm1199_vm12 = vmmov %vm1198_vm7 }
 0x20b   : > { %v849_v5 = vunpack.i.h.bf16 %v847_v2  ;;  %v848_v6 = vunpack.i.l.bf16 %v847_v2  ;;  %v858_v20 = vunpack.i.l.bf16 %v857_v1  ;;  %v859_v21 = vunpack.i.h.bf16 %v857_v1 }
 0x20c   : > { %740 = vmatprep.subr.msk.bf16.mxu1 %vm994_vm6, %v739_v3 }
 0x20d   : > { %v501_v10 = vsel %vm314_vm4, %v496_v42, %v848_v6  ;;  %v502_v11 = vsel %vm314_vm4, %v848_v6, %v849_v5  ;;  %743 = vmatpush1.bf16.msk.msra.mxu1 %vm1003_vm8, %v742_v4  ;;  %vm1196_vm4 = vcmask 924672  }
 0x20e   : > { %v745_v12 = vpack.c.bf16 %v502_v11, %v490_v8  ;;  %v748_v13 = vpack.c.bf16 %v501_v10, %v489_v7  ;;  %v867_v14 = vpop.permute.xlu0 %866  ;;  %v560_v15 = vpop.permute.xlu1 %559  ;;  %v531_v27 = vsel %vm1196_vm4, %v526_v45, %v858_v20  ;;  %vm1197_vm0 = vmmov %vm1196_vm4 }
 0x20f   : > { %v869_v16 = vunpack.i.h.bf16 %v867_v14  ;;  %v868_v17 = vunpack.i.l.bf16 %v867_v14  ;;  %v532_v29 = vsel %vm1197_vm0, %v858_v20, %v859_v21 }
 0x210   : > { %746 = vmatprep.subr.msk.bf16.mxu1 %vm1194_vm1, %v745_v12 }
 0x211   : > { %749 = vmatpush1.bf16.msk.msra.mxu1 %vm1195_vm2, %v748_v13  ;;  %v543_v23 = vsel %vm359_vm5, %v868_v17, %v869_v16 }
 0x212   : > { %v862_v22 = vpop.permute.xlu1 %861  ;;  %752 = vmatprep.subr.msk.bf16.mxu1 %vm1046_vm15, %v751_v19  ;;  %v547_v57 = vsel %vm1012_vm10, %v543_v23, 0.0 }
 0x213   : > { %v864_v24 = vunpack.i.h.bf16 %v862_v22  ;;  %v863_v26 = vunpack.i.l.bf16 %v862_v22  ;;  %v577_v38 = vpack.c.bf16 %v547_v57, %v547_v57 }
 0x215   : > { %v565_v28 = vsel %vm1198_vm7, %v560_v15, %v863_v26  ;;  %v566_v30 = vsel %vm1199_vm12, %v863_v26, %v864_v24  ;;  %755 = vmatpush1.bf16.msk.msra.mxu1 %vm1055_vm11, %v754_v25  ;;  %v589_v43 = vsel %vm408_vm14, %v577_v38, 0 }
 0x216   : > { %v757_v31 = vpack.c.bf16 %v566_v30, %v532_v29  ;;  %v760_v34 = vpack.c.bf16 %v565_v28, %v531_v27  ;;  %v542_v35 = vpop.permute.xlu1 %541 }
 0x217   : > { %v544_v33 = vsel %vm359_vm5, %v869_v16, %v542_v35 }
 0x218   : > { %v548_v36 = vsel %vm1007_vm9, %v544_v33, 0.0  ;;  %758 = vmatprep.subr.msk.bf16.mxu1 %vm994_vm6, %v757_v31 }
 0x219   : > { %v578_v40 = vpack.c.bf16 %v548_v36, %v548_v36  ;;  %761 = vmatpush1.bf16.msk.msra.mxu1 %vm1003_vm8, %v760_v34 }
 0x21b   : > { %762 = vmatprep.subr.msk.bf16.mxu1 %vm408_vm14, %v578_v40 }
 0x21d   : > { %603 = vmatpush1.bf16.msra.mxu1 %v589_v43 }
 0x21f   : > { %v583_v39 = vpop.permute.xlu0 %582 }
 0x220   : > { %763 = vmatmul.mubr.msk.bf16.vlgmr.msra.gmra.mrb[0].mxu1 %vm404_vm13, %v464_v61 }
 0x2f3   : > { %v628_v32 = vpop.f32.mrb[0].mxu1 }
 0x2f4   : > { %v629_v41 = vadd.f32 %v628_v32, %v583_v39  ;;  %v630_v42 = vpop.f32.mrb[1].mxu1 }
 0x2f5   : > { %v631_v44 = vadd.f32 %v630_v42, %v583_v39  ;;  %v632_v45 = vpop.f32.mrb[2].mxu1 }
 0x2f6   : > { %v635_v37 = vmul.f32 0.1, %v629_v41  ;;  %v633_v46 = vpop.f32.mrb[3].mxu1 }
 0x2f7   : > { %v636_v47 = vmul.f32 0.1, %v631_v44 }
 0x2f8   : > { %v637_v48 = vmax.f32 %v629_v41, %v635_v37 }
 0x2f9   : > { %v638_v49 = vmax.f32 %v631_v44, %v636_v47 }
 0x2fb   : > { %v769_v50 = vpack.c.bf16 %v638_v49, %v637_v48 }
 0x2fd   : > { %647 = vst [vmem:[%s224_s17] sm:$0xff] %v769_v50 }
 0x2fe PF: > { %s15_s18 = sadd.s32 1, %s877_s18  }
 0x2ff   : > { %p12_p4 = scmp.ge.s32.totalorder %s15_s18, 4  }
 0x301   :  { %14 = sbr.rel (!%p12_p4) target bundleno = 1 (0x1), region = 70 }

</bundles_post_ra>
